<compile_context>
chip_gen: v7x
topology: tpu7x:2x2x1
jax: 0.10.0
libtpu: 0.0.40
codegen_flags: <defaults>
</compile_context>

<pallas_src>
import functools

import jax
import jax.numpy as jnp
from jax.experimental import pallas as pl
from jax.experimental.pallas import tpu as pltpu

# ----------------------------- hyperparameters ------------------------------
IMG_C, IMG_H, IMG_W = 3, 16, 16        # small stand-in for 3x224x224
PATCH = 4
GH, GW = IMG_H // PATCH, IMG_W // PATCH
N_PATCH = GH * GW                      # 16 patches
PATCH_K = IMG_C * PATCH * PATCH        # 48 (im2col contraction dim)
K_PAD = 128                            # zero-padded to a full lane width
VISION_WIDTH = 128                     # lane-dense widths (multiples of 128)
TEXT_WIDTH = 128
EMBED_DIM = 128
VOCAB = 64
CTX_LEN = 8
T_PAD = 128                            # lane-dense text/output dimension
MB = 8                                 # images per grid step (sublane-aligned)


# ------------------------------ fused kernel --------------------------------

def _eva_clip_fused_kernel(
    pooled_ref,       # (MB, K_PAD)            bf16  mean-pooled im2col patches
    w_vis_ref,        # (K_PAD, EMBED_DIM)     bf16  fused patch_w @ vis_proj_w
    txt_tok_ref,      # (T_PAD, TEXT_WIDTH)    bf16  EOT embeds (+pos), zero-padded rows
    txt_proj_w_ref,   # (TEXT_WIDTH, EMBED_DIM) bf16
    bias_ref,         # (2, EMBED_DIM)         f32   row 0: fused vision bias, row 1: text proj bias
    probs_ref,        # (MB, T_PAD)            f32
    *, n_txt,
):
    biases = bias_ref[...]                                          # (2, E) f32

    # ------------- vision tower stand-in (fully fused linear path) ----------
    # TODO(synk): full EVA-02 ViT-L transformer stack replaced by a linear
    # stand-in; the init-time weight fusion below is only valid while it is.
    img = jnp.dot(pooled_ref[...], w_vis_ref[...],
                  preferred_element_type=jnp.float32)               # (MB, E)
    img = img + biases[0:1, :]

    # ------------------------- text tower stand-in --------------------------
    # TODO(synk): text transformer stack replaced by EOT-token embedding.
    txt = jnp.dot(txt_tok_ref[...], txt_proj_w_ref[...],
                  preferred_element_type=jnp.float32)               # (T_PAD, E)
    txt = txt + biases[1:2, :]

    # ------------------------------ CLIP head -------------------------------
    # image_features /= image_features.norm(dim=-1, keepdim=True)
    img = img * jax.lax.rsqrt(jnp.sum(img * img, axis=-1, keepdims=True))
    # text_features  /= text_features.norm(dim=-1, keepdim=True)
    txt = txt * jax.lax.rsqrt(jnp.sum(txt * txt, axis=-1, keepdims=True))
    # 100.0 * image_features @ text_features.T  (contract last dims directly)
    logits = 100.0 * jax.lax.dot_general(
        img, txt, (((1,), (1,)), ((), ())),
        preferred_element_type=jnp.float32)                         # (MB, T_PAD)
    # Mask padded text columns so the lane-dense softmax only sees real texts.
    col = jax.lax.broadcasted_iota(jnp.int32, logits.shape, 1)
    logits = jnp.where(col < n_txt, logits, -jnp.inf)
    # softmax(dim=-1), max-subtracted; denominator via EUP reciprocal.
    m = jnp.max(logits, axis=-1, keepdims=True)
    e = jnp.exp(logits - m)
    inv = pl.reciprocal(jnp.sum(e, axis=-1, keepdims=True), approx=True)
    probs_ref[...] = (e * inv).astype(probs_ref.dtype)


# --------------------------- parameter construction -------------------------

def init_params(key):
    ks = jax.random.split(key, 6)
    s = 0.02
    # raw (unfused) parameters of the two stand-in towers
    patch_w = jax.random.normal(ks[0], (PATCH_K, VISION_WIDTH), jnp.float32) * s
    patch_w = jnp.pad(patch_w, ((0, K_PAD - PATCH_K), (0, 0)))       # (K_PAD, Wv)
    patch_b = jnp.zeros((1, VISION_WIDTH), jnp.float32)
    vis_pos = jax.random.normal(ks[1], (N_PATCH, VISION_WIDTH), jnp.float32) * s
    vis_proj_w = jax.random.normal(ks[2], (VISION_WIDTH, EMBED_DIM), jnp.float32) * s
    vis_proj_b = jnp.zeros((1, EMBED_DIM), jnp.float32)
    tok_emb = jax.random.normal(ks[3], (VOCAB, TEXT_WIDTH), jnp.float32) * s
    txt_pos_last = jax.random.normal(ks[4], (1, TEXT_WIDTH), jnp.float32) * s
    txt_proj_w = jax.random.normal(ks[5], (TEXT_WIDTH, EMBED_DIM), jnp.float32) * s
    txt_proj_b = jnp.zeros((1, EMBED_DIM), jnp.float32)

    # ---- init-time constant folding / matmul fusion (perf review 1, 2, 6) --
    # mean(patches @ W + b + pos) @ P + pb
    #   == mean(patches) @ (W @ P) + mean(b + pos) @ P + pb
    # TODO(synk): remove these fusions when the real EVA-02 transformer stack
    # replaces the linear stand-in (they are only valid for a linear tower).
    w_vis_fused = patch_w @ vis_proj_w                               # (K_PAD, E) f32
    mean_vis_bias = jnp.mean(patch_b + vis_pos, axis=0, keepdims=True)
    b_vis_fused = mean_vis_bias @ vis_proj_w + vis_proj_b            # (1, E) f32
    tok_emb_eot = tok_emb + txt_pos_last                             # pos folded in
    biases = jnp.concatenate([b_vis_fused, txt_proj_b], axis=0)      # (2, E) f32

    return {
        "w_vis_fused": w_vis_fused.astype(jnp.bfloat16),
        "tok_emb_eot": tok_emb_eot.astype(jnp.bfloat16),
        "txt_proj_w":  txt_proj_w.astype(jnp.bfloat16),
        "biases":      biases,                                       # stays f32
    }


# ------------------------------ forward wrapper ------------------------------

# CLIP preprocess normalization constants (the Normalize() part of preprocess)
_CLIP_MEAN = jnp.array([0.48145466, 0.4578275, 0.40821073], jnp.float32).reshape(3, 1, 1)
_CLIP_STD = jnp.array([0.26862954, 0.26130258, 0.27577711], jnp.float32).reshape(3, 1, 1)


def _pooled_patches(image_chw):
    """Normalize + im2col of Conv2d(C, W, k=PATCH, s=PATCH) + mean over patches.

    The mean-pool commutes with the (linear) patch embed, so it is hoisted out
    of the kernel (perf review item 2)."""
    # TODO(synk): torchvision resize/center-crop of self.preprocess has no
    # Pallas equivalent; input is assumed already at model resolution.
    x = (image_chw - _CLIP_MEAN) / _CLIP_STD                         # (C, H, W)
    p = x.reshape(IMG_C, GH, PATCH, GW, PATCH)
    p = jnp.transpose(p, (1, 3, 0, 2, 4)).reshape(N_PATCH, PATCH_K)
    p = jnp.pad(p, ((0, 0), (0, K_PAD - PATCH_K)))                   # lane-dense K
    return jnp.mean(p, axis=0)                                       # (K_PAD,)


def eva_clip_probs(params, images_chw, token_ids):
    """Batched EvaClip head: (B, C, H, W) images x (T, CTX_LEN) texts -> (B, T).

    Jittable, no host sync.  B=1, T=1 reproduces EvaClip.forward exactly."""
    B = images_chw.shape[0]
    T = token_ids.shape[0]
    assert T <= T_PAD

    pooled = jax.vmap(_pooled_patches)(images_chw)                   # (B, K_PAD) f32
    b_pad = ((B + MB - 1) // MB) * MB                                # sublane-aligned batch
    pooled = jnp.pad(pooled, ((0, b_pad - B), (0, 0))).astype(jnp.bfloat16)

    # TODO(synk): BPE tokenizer has no Pallas equivalent; text arrives as ids.
    txt_tok = params["tok_emb_eot"][token_ids[:, -1]]                # (T, Wt) bf16
    txt_tok = jnp.pad(txt_tok, ((0, T_PAD - T), (0, 0)))             # lane-dense T

    probs = pl.pallas_call(
        functools.partial(_eva_clip_fused_kernel, n_txt=T),
        out_shape=jax.ShapeDtypeStruct((b_pad, T_PAD), jnp.float32),
        grid=(b_pad // MB,),
        in_specs=[
            pl.BlockSpec((MB, K_PAD), lambda b: (b, 0)),             # per-step image slab
            pl.BlockSpec((K_PAD, EMBED_DIM), lambda b: (0, 0)),      # shared weights
            pl.BlockSpec((T_PAD, TEXT_WIDTH), lambda b: (0, 0)),
            pl.BlockSpec((TEXT_WIDTH, EMBED_DIM), lambda b: (0, 0)),
            pl.BlockSpec((2, EMBED_DIM), lambda b: (0, 0)),
        ],
        out_specs=pl.BlockSpec((MB, T_PAD), lambda b: (b, 0)),
        compiler_params=pltpu.CompilerParams(
            dimension_semantics=("parallel",)),                      # v7x: both TCs
    )(pooled, params["w_vis_fused"], txt_tok, params["txt_proj_w"],
      params["biases"])

    return probs[:B, :T]


def eva_clip_forward(params, image_chw, token_ids):
    """Exact EvaClip.forward semantics: one image, one tokenized text ->
    float(text_probs[0])."""
    probs = eva_clip_probs(params, image_chw[None], token_ids)
    return float(probs[0, 0])   # host sync, like the PyTorch float(...) return


# ------------------------------ pure-JAX reference ---------------------------

def eva_clip_probs_ref(params, images_chw, token_ids):
    pooled = jax.vmap(_pooled_patches)(images_chw).astype(jnp.bfloat16)
    img = jnp.dot(pooled, params["w_vis_fused"],
                  preferred_element_type=jnp.float32) + params["biases"][0:1]
    txt_tok = params["tok_emb_eot"][token_ids[:, -1]]
    txt = jnp.dot(txt_tok, params["txt_proj_w"],
                  preferred_element_type=jnp.float32) + params["biases"][1:2]
    img = img / jnp.linalg.norm(img, axis=-1, keepdims=True)
    txt = txt / jnp.linalg.norm(txt, axis=-1, keepdims=True)
    logits = 100.0 * img @ txt.T
    return jax.nn.softmax(logits, axis=-1)


# ----------------------------------- main ------------------------------------

if __name__ == "__main__":
    key = jax.random.PRNGKey(0)
    pkey, ikey, tkey, t4key = jax.random.split(key, 4)

    params = init_params(pkey)
    images = jax.random.uniform(ikey, (2, IMG_C, IMG_H, IMG_W), jnp.float32)   # batch of CHW in [0,1]
    text1 = jax.random.randint(tkey, (1, CTX_LEN), 0, VOCAB, dtype=jnp.int32)  # single text
    text4 = jax.random.randint(t4key, (4, CTX_LEN), 0, VOCAB, dtype=jnp.int32)

    fwd = jax.jit(eva_clip_probs)

    # Exact EvaClip.forward semantics: one image, one text -> scalar prob (~1).
    probs1 = fwd(params, images[:1], text1)
    jax.block_until_ready(probs1)
    p = float(probs1[0, 0])
    assert abs(p - 1.0) < 2e-3, p

    # Batched: 2 images x 4 candidate texts; rows sum to 1 and match reference.
    probs4 = fwd(params, images, text4)
    jax.block_until_ready(probs4)
    assert jnp.allclose(jnp.sum(probs4, axis=-1), 1.0, atol=2e-3)
    ref4 = eva_clip_probs_ref(params, images, text4)
    assert jnp.allclose(probs4, ref4, atol=5e-3), (probs4, ref4)

    print("KERNEL_OK")
</pallas_src>

<mosaic_0001>
module attributes {stable_mosaic.version = 11 : i64} {
  func.func @_eva_clip_fused_kernel(%arg0: i32, %arg1: memref<8x128xbf16, #tpu.memory_space<vmem>>, %arg2: memref<128x128xbf16, #tpu.memory_space<vmem>>, %arg3: memref<128x128xbf16, #tpu.memory_space<vmem>>, %arg4: memref<128x128xbf16, #tpu.memory_space<vmem>>, %arg5: memref<2x128xf32, #tpu.memory_space<vmem>>, %arg6: memref<8x128xf32, #tpu.memory_space<vmem>>) attributes {dimension_semantics = [#tpu.dimension_semantics<parallel>], iteration_bounds = array<i64: 1>, scalar_prefetch = 0 : i64, scratch_operands = 0 : i64, tpu.core_type = #tpu.core_type<tc>, window_params = [{transform_indices = @transform_0, window_bounds = array<i64: 8, 128>}, {pipeline_mode = #tpu.pipeline_mode<synchronous>, transform_indices = @transform_1, window_bounds = array<i64: 128, 128>}, {pipeline_mode = #tpu.pipeline_mode<synchronous>, transform_indices = @transform_2, window_bounds = array<i64: 128, 128>}, {pipeline_mode = #tpu.pipeline_mode<synchronous>, transform_indices = @transform_3, window_bounds = array<i64: 128, 128>}, {pipeline_mode = #tpu.pipeline_mode<synchronous>, transform_indices = @transform_4, window_bounds = array<i64: 2, 128>}, {transform_indices = @transform_5, window_bounds = array<i64: 8, 128>}]} {
    %c0 = arith.constant 0 : index
    %c0_0 = arith.constant 0 : index
    %0 = vector.load %arg5[%c0, %c0_0] : memref<2x128xf32, #tpu.memory_space<vmem>>, vector<2x128xf32>
    %c0_1 = arith.constant 0 : index
    %c0_2 = arith.constant 0 : index
    %1 = vector.load %arg1[%c0_1, %c0_2] : memref<8x128xbf16, #tpu.memory_space<vmem>>, vector<8x128xbf16>
    %c0_3 = arith.constant 0 : index
    %c0_4 = arith.constant 0 : index
    %2 = vector.load %arg2[%c0_3, %c0_4] : memref<128x128xbf16, #tpu.memory_space<vmem>>, vector<128x128xbf16>
    %cst = arith.constant dense<0.000000e+00> : vector<8x128xf32>
    %3 = tpu.matmul %1, %2, %cst {dimension_numbers = #tpu.dot_dimension_numbers<[1], [0], [0], [1], [0, 0, 1, 1], [], []>} : vector<8x128xbf16>, vector<128x128xbf16>, vector<8x128xf32> -> vector<8x128xf32>
    %4 = vector.extract_strided_slice %0 {offsets = [0, 0], sizes = [1, 128], strides = [1, 1]} : vector<2x128xf32> to vector<1x128xf32>
    %5 = vector.broadcast %4 : vector<1x128xf32> to vector<8x128xf32>
    %6 = arith.addf %3, %5 : vector<8x128xf32>
    %c0_5 = arith.constant 0 : index
    %c0_6 = arith.constant 0 : index
    %7 = vector.load %arg3[%c0_5, %c0_6] : memref<128x128xbf16, #tpu.memory_space<vmem>>, vector<128x128xbf16>
    %c0_7 = arith.constant 0 : index
    %c0_8 = arith.constant 0 : index
    %8 = vector.load %arg4[%c0_7, %c0_8] : memref<128x128xbf16, #tpu.memory_space<vmem>>, vector<128x128xbf16>
    %cst_9 = arith.constant dense<0.000000e+00> : vector<128x128xf32>
    %9 = tpu.matmul %7, %8, %cst_9 {dimension_numbers = #tpu.dot_dimension_numbers<[1], [0], [0], [1], [0, 0, 1, 1], [], []>} : vector<128x128xbf16>, vector<128x128xbf16>, vector<128x128xf32> -> vector<128x128xf32>
    %10 = vector.extract_strided_slice %0 {offsets = [1, 0], sizes = [1, 128], strides = [1, 1]} : vector<2x128xf32> to vector<1x128xf32>
    %11 = vector.broadcast %10 : vector<1x128xf32> to vector<128x128xf32>
    %12 = arith.addf %9, %11 : vector<128x128xf32>
    %13 = arith.mulf %6, %6 : vector<8x128xf32>
    %cst_10 = arith.constant dense<0.000000e+00> : vector<8xf32>
    %14 = vector.multi_reduction <add>, %13, %cst_10 [1] : vector<8x128xf32> to vector<8xf32>
    %15 = vector.shape_cast %14 : vector<8xf32> to vector<8x1xf32>
    %16 = math.rsqrt %15 : vector<8x1xf32>
    %17 = vector.broadcast %16 : vector<8x1xf32> to vector<8x128xf32>
    %18 = arith.mulf %6, %17 : vector<8x128xf32>
    %19 = arith.mulf %12, %12 : vector<128x128xf32>
    %cst_11 = arith.constant dense<0.000000e+00> : vector<128xf32>
    %20 = vector.multi_reduction <add>, %19, %cst_11 [1] : vector<128x128xf32> to vector<128xf32>
    %21 = vector.shape_cast %20 : vector<128xf32> to vector<128x1xf32>
    %22 = math.rsqrt %21 : vector<128x1xf32>
    %23 = vector.broadcast %22 : vector<128x1xf32> to vector<128x128xf32>
    %24 = arith.mulf %12, %23 : vector<128x128xf32>
    %cst_12 = arith.constant dense<0.000000e+00> : vector<8x128xf32>
    %25 = tpu.matmul %18, %24, %cst_12 {dimension_numbers = #tpu.dot_dimension_numbers<[1], [1], [0], [0], [0, 0, 1, 0], [], []>} : vector<8x128xf32>, vector<128x128xf32>, vector<8x128xf32> -> vector<8x128xf32>
    %cst_13 = arith.constant 1.000000e+02 : f32
    %26 = vector.broadcast %cst_13 : f32 to vector<8x128xf32>
    %27 = arith.mulf %26, %25 : vector<8x128xf32>
    %28 = tpu.iota {dimensions = array<i32: 1>} : vector<8x128xi32>
    %c1_i32 = arith.constant 1 : i32
    %29 = vector.broadcast %c1_i32 : i32 to vector<8x128xi32>
    %30 = arith.cmpi slt, %28, %29 : vector<8x128xi32>
    %cst_14 = arith.constant 0xFF800000 : f32
    %31 = vector.broadcast %cst_14 : f32 to vector<8x128xf32>
    %32 = arith.select %30, %27, %31 : vector<8x128xi1>, vector<8x128xf32>
    %cst_15 = arith.constant dense<0xFF800000> : vector<8xf32>
    %33 = vector.multi_reduction <maximumf>, %32, %cst_15 [1] : vector<8x128xf32> to vector<8xf32>
    %34 = vector.shape_cast %33 : vector<8xf32> to vector<8x1xf32>
    %35 = vector.broadcast %34 : vector<8x1xf32> to vector<8x128xf32>
    %36 = arith.subf %32, %35 : vector<8x128xf32>
    %37 = math.exp %36 : vector<8x128xf32>
    %cst_16 = arith.constant dense<0.000000e+00> : vector<8xf32>
    %38 = vector.multi_reduction <add>, %37, %cst_16 [1] : vector<8x128xf32> to vector<8xf32>
    %39 = vector.shape_cast %38 : vector<8xf32> to vector<8x1xf32>
    %40 = tpu.reciprocal %39 {approx = true} : vector<8x1xf32> -> vector<8x1xf32>
    %41 = vector.broadcast %40 : vector<8x1xf32> to vector<8x128xf32>
    %42 = arith.mulf %37, %41 : vector<8x128xf32>
    %c0_17 = arith.constant 0 : index
    %c0_18 = arith.constant 0 : index
    %43 = vector.load %arg6[%c0_17, %c0_18] : memref<8x128xf32, #tpu.memory_space<vmem>>, vector<8x128xf32>
    tpu.vector_store %arg6[%c0_17, %c0_18], %42 {strides = array<i32>} : memref<8x128xf32, #tpu.memory_space<vmem>>, vector<8x128xf32>,
    return
  }
  func.func @transform_0(%arg0: i32) -> (i32, i32) {
    %c0_i32 = arith.constant 0 : i32
    %c0_i32_0 = arith.constant 0 : i32
    return %arg0, %c0_i32 : i32, i32
  }
  func.func @transform_1(%arg0: i32) -> (i32, i32) {
    %c0_i32 = arith.constant 0 : i32
    %c0_i32_0 = arith.constant 0 : i32
    %c0_i32_1 = arith.constant 0 : i32
    return %c0_i32, %c0_i32_0 : i32, i32
  }
  func.func @transform_2(%arg0: i32) -> (i32, i32) {
    %c0_i32 = arith.constant 0 : i32
    %c0_i32_0 = arith.constant 0 : i32
    %c0_i32_1 = arith.constant 0 : i32
    return %c0_i32, %c0_i32_0 : i32, i32
  }
  func.func @transform_3(%arg0: i32) -> (i32, i32) {
    %c0_i32 = arith.constant 0 : i32
    %c0_i32_0 = arith.constant 0 : i32
    %c0_i32_1 = arith.constant 0 : i32
    return %c0_i32, %c0_i32_0 : i32, i32
  }
  func.func @transform_4(%arg0: i32) -> (i32, i32) {
    %c0_i32 = arith.constant 0 : i32
    %c0_i32_0 = arith.constant 0 : i32
    %c0_i32_1 = arith.constant 0 : i32
    return %c0_i32, %c0_i32_0 : i32, i32
  }
  func.func @transform_5(%arg0: i32) -> (i32, i32) {
    %c0_i32 = arith.constant 0 : i32
    %c0_i32_0 = arith.constant 0 : i32
    return %arg0, %c0_i32 : i32, i32
  }
}

</mosaic_0001>

<bundles_post_ra>
// kernel: eva_clip_probs.1
= control target key start
LH: loop header
LB: loop body
LE: loop exit
PB: predicated region body
PF: predicated region fallthrough
CT: control target
= control target key end

     0   :  { %v776_v0 = vmov 0.0   ;;  %vm777_vm0 = vmmov 0   ;;  %v39_v30 = vlaneseq  ;;  %s988_s1 = inlined_call_operand.vmem [shape: bf16[128,128], index: 1, kind: input, shape index: {}]   ;;  %s989_s3 = inlined_call_operand.vmem [shape: bf16[128,128], index: 3, kind: input, shape index: {}]   ;;  %s990_s2 = inlined_call_operand.vmem [shape: bf16[128,128], index: 2, kind: input, shape index: {}]   ;;  %s991_s0 = inlined_call_operand.vmem [shape: bf16[8,128], index: 0, kind: input, shape index: {}]   ;;  %s992_s4 = inlined_call_operand.vmem [shape: f32[2,128], index: 4, kind: input, shape index: {}]   ;;  %s993_s5 = inlined_call_operand.vmem [shape: f32[8,128], index: 5, kind: output, shape index: {}]  }
   0x1   :  { %600 = vmatprep.subr.bf16.mxu1 %v776_v0  ;;  %v714_v1 = vld [vmem:[%s988_s1] sm:$0xff]   ;;  %616 = vmatprep.mubr.msk.bf16.mxu1 %vm777_vm0, %v776_v0  ;;  %v715_v2 = vld [vmem:[%s988_s1 + $0x8] sm:$0xff]   ;;  %v716_v3 = vld [vmem:[%s988_s1 + $0x10] sm:$0xff]  }
   0x2   :  { %684 = vmatprep.mubr.msk.f32.mxu0 %vm777_vm0, %v776_v0  ;;  %601 = vmatpush3.bf16.msra.mxu1 %v714_v1  ;;  %v717_v4 = vld [vmem:[%s988_s1 + $0x18] sm:$0xff]   ;;  %v718_v5 = vld [vmem:[%s988_s1 + $0x20] sm:$0xff]   ;;  %v719_v6 = vld [vmem:[%s988_s1 + $0x28] sm:$0xff]   ;;  %v40_v31 = vshrl.u32 %v39_v30, 7 }
   0x3   :  { %602 = vmatprep.subr.bf16.mxu1 %v776_v0  ;;  %v720_v7 = vld [vmem:[%s988_s1 + $0x30] sm:$0xff]   ;;  %v721_v8 = vld [vmem:[%s988_s1 + $0x38] sm:$0xff]   ;;  %v722_v9 = vld [vmem:[%s989_s3] sm:$0xff]  }
   0x4   :  { %v22_v10 = vld [vmem:[%s991_s0] sm:$0xf]  ;;  %v723_v12 = vld [vmem:[%s989_s3 + $0x8] sm:$0xff]   ;;  %v724_v13 = vld [vmem:[%s989_s3 + $0x10] sm:$0xff]   ;;  %v165_v32 = vsub.s32 1, %v40_v31 }
   0x5   :  { %v730_v11 = vld [vmem:[%s990_s2] sm:$0xff]   ;;  %v725_v14 = vld [vmem:[%s989_s3 + $0x18] sm:$0xff]   ;;  %v727_v16 = vld [vmem:[%s989_s3 + $0x28] sm:$0xff]  }
   0x6   :  { %603 = vmatpush3.bf16.msra.mxu1 %v715_v2  ;;  %v726_v15 = vld [vmem:[%s989_s3 + $0x20] sm:$0xff]   ;;  %v728_v17 = vld [vmem:[%s989_s3 + $0x30] sm:$0xff]   ;;  %v729_v18 = vld [vmem:[%s989_s3 + $0x38] sm:$0xff]  }
   0x7   :  { %604 = vmatprep.subr.bf16.mxu1 %v776_v0  ;;  %v731_v19 = vld [vmem:[%s990_s2 + $0x8] sm:$0xff]   ;;  %v732_v20 = vld [vmem:[%s990_s2 + $0x10] sm:$0xff]   ;;  %v733_v21 = vld [vmem:[%s990_s2 + $0x18] sm:$0xff]  }
   0x8   :  { %v734_v22 = vld [vmem:[%s990_s2 + $0x20] sm:$0xff]   ;;  %v735_v23 = vld [vmem:[%s990_s2 + $0x28] sm:$0xff]   ;;  %v736_v24 = vld [vmem:[%s990_s2 + $0x30] sm:$0xff]  }
   0x9   :  { %v737_v25 = vld [vmem:[%s990_s2 + $0x38] sm:$0xff]   ;;  %v21_v33 = vld [vmem:[%s992_s4] sm:$0x3] }
   0xa   :  { %605 = vmatpush3.bf16.msra.mxu1 %v716_v3  ;;  %v166_v34 = vrot.slane %v21_v33, %v165_v32 }
   0xb   :  { %606 = vmatprep.subr.bf16.mxu1 %v776_v0 }
   0xe   :  { %607 = vmatpush3.bf16.msra.mxu1 %v717_v4 }
   0xf   :  { %608 = vmatprep.subr.bf16.mxu1 %v776_v0 }
  0x12   :  { %609 = vmatpush3.bf16.msra.mxu1 %v718_v5 }
  0x13   :  { %610 = vmatprep.subr.bf16.mxu1 %v776_v0 }
  0x16   :  { %611 = vmatpush3.bf16.msra.mxu1 %v719_v6  ;;  %v41_v6 = vsub.s32 0, %v40_v31 }
  0x17   :  { %612 = vmatprep.subr.bf16.mxu1 %v776_v0 }
  0x1a   :  { %613 = vmatpush3.bf16.msra.mxu1 %v720_v7 }
  0x1b   :  { %614 = vmatprep.subr.bf16.mxu1 %v776_v0 }
  0x1e   :  { %615 = vmatpush3.bf16.msra.mxu1 %v721_v8 }
  0x1f   :  { %620 = vmatprep.subr.bf16.mxu1 %v722_v9 }
  0x21   :  { %617 = vmatmul.mubr.bf16.vlgmr.msra.gmra.mrb[0].mxu1 %v22_v10 }
  0x22   :  { %621 = vmatpush3.bf16.msra.mxu1 %v722_v9  ;;  %636 = vmatprep.mubr.bf16.mxu1 %v730_v11 }
  0x23   :  { %622 = vmatprep.subr.bf16.mxu1 %v723_v12 }
  0x26   :  { %623 = vmatpush3.bf16.msra.mxu1 %v723_v12 }
  0x27   :  { %624 = vmatprep.subr.bf16.mxu1 %v724_v13 }
  0x2a   :  { %625 = vmatpush3.bf16.msra.mxu1 %v724_v13 }
  0x2b   :  { %626 = vmatprep.subr.bf16.mxu1 %v725_v14 }
  0x2e   :  { %627 = vmatpush3.bf16.msra.mxu1 %v725_v14  ;;  %v42_v14 = vrot.slane %v21_v33, %v41_v6 }
  0x2f   :  { %628 = vmatprep.subr.bf16.mxu1 %v726_v15 }
  0x32   :  { %629 = vmatpush3.bf16.msra.mxu1 %v726_v15 }
  0x33   :  { %630 = vmatprep.subr.bf16.mxu1 %v727_v16 }
  0x36   :  { %631 = vmatpush3.bf16.msra.mxu1 %v727_v16 }
  0x37   :  { %632 = vmatprep.subr.bf16.mxu1 %v728_v17 }
  0x3a   :  { %633 = vmatpush3.bf16.msra.mxu1 %v728_v17 }
  0x3b   :  { %634 = vmatprep.subr.bf16.mxu1 %v729_v18 }
  0x3e   :  { %635 = vmatpush3.bf16.msra.mxu1 %v729_v18 }
  0x41   :  { %637 = vmatmul.mubr.bf16.vlgmr.msra.gmra.mrb[4].mxu1 %v731_v19 }
  0x42   :  { %640 = vmatprep.mubr.bf16.mxu1 %v732_v20 }
  0x49   :  { %641 = vmatmul.mubr.bf16.gmra.mrb[8].mxu1 %v733_v21 }
  0x4a   :  { %644 = vmatprep.mubr.bf16.mxu1 %v734_v22 }
  0x51   :  { %645 = vmatmul.mubr.bf16.gmra.mrb[12].mxu1 %v735_v23  ;;  %v778_v23 = vmov 0.0|0.0  }
  0x52   :  { %648 = vmatprep.mubr.bf16.mxu1 %v736_v24  ;;  %687 = vmatprep.subr.bf16.mxu0 %v778_v23 }
  0x59   :  { %649 = vmatmul.mubr.bf16.gmra.mrb[16].mxu1 %v737_v25 }
  0xf4   :  { %v884_v26 = vpop.f32.mrb[0].mxu1 }
  0xf5   :  { %v618_v27 = vpop.f32.mrb[1].mxu1  ;;  %v953_v20 = vadd.f32 %v884_v26, %v42_v14 }
  0xf6   :  { %v128_v28 = vpop.f32.mrb[2].mxu1 }
  0xf7   :  { %v619_v29 = vpop.f32.mrb[3].mxu1  ;;  %v360_v22 = vmul.f32 %v953_v20, %v953_v20 }
 0x114   :  { %v638_v35 = vpop.f32.mrb[4].mxu1 }
 0x115   :  { %v890_v36 = vadd.f32 %v638_v35, %v166_v34  ;;  %v297_v37 = vpop.f32.mrb[5].mxu1 }
 0x116   :  { %v892_v38 = vadd.f32 %v297_v37, %v166_v34  ;;  %v639_v39 = vpop.f32.mrb[6].mxu1 }
 0x117   :  { %v894_v40 = vadd.f32 %v639_v39, %v166_v34  ;;  %v300_v41 = vpop.f32.mrb[7].mxu1  ;;  %v367_v42 = vmul.f32 %v890_v36, %v890_v36 }
 0x118   :  { %v898_v43 = vadd.f32 %v300_v41, %v166_v34  ;;  %v365_v44 = vmul.f32 %v892_v38, %v892_v38 }
 0x119   :  { %385 = vadd.xlane.f32.xlu1 %v367_v42  ;;  %v368_v45 = vmul.f32 %v894_v40, %v894_v40 }
 0x11a   :  { %381 = vadd.xlane.f32.xlu0 %v365_v44  ;;  %v366_v47 = vmul.f32 %v898_v43, %v898_v43 }
 0x11c   :  { %v642_v46 = vpop.f32.mrb[8].mxu1 }
 0x11d   :  { %387 = vadd.xlane.f32.xlu1 %v368_v45  ;;  %v313_v48 = vpop.f32.mrb[9].mxu1  ;;  %v906_v49 = vadd.f32 %v642_v46, %v166_v34 }
 0x11e   :  { %v908_v50 = vadd.f32 %v313_v48, %v166_v34  ;;  %v643_v51 = vpop.f32.mrb[10].mxu1  ;;  %383 = vadd.xlane.f32.xlu0 %v366_v47 }
 0x11f   :  { %v316_v52 = vpop.f32.mrb[11].mxu1  ;;  %v910_v53 = vadd.f32 %v643_v51, %v166_v34  ;;  %v371_v57 = vmul.f32 %v906_v49, %v906_v49 }
 0x120   :  { %v912_v54 = vadd.f32 %v316_v52, %v166_v34  ;;  %v369_v55 = vmul.f32 %v908_v50, %v908_v50 }
 0x121   :  { %v372_v59 = vmul.f32 %v910_v53, %v910_v53 }
 0x122   :  { %389 = vadd.xlane.f32.xlu0 %v369_v55  ;;  %v370_v56 = vmul.f32 %v912_v54, %v912_v54 }
 0x124   :  { %v646_v58 = vpop.f32.mrb[12].mxu1  ;;  %391 = vadd.xlane.f32.xlu1 %v370_v56 }
 0x125   :  { %v329_v60 = vpop.f32.mrb[13].mxu1  ;;  %v922_v61 = vadd.f32 %v646_v58, %v166_v34 }
 0x126   :  { %v924_v62 = vadd.f32 %v329_v60, %v166_v34  ;;  %v647_v63 = vpop.f32.mrb[14].mxu1  ;;  %393 = vadd.xlane.f32.xlu0 %v371_v57 }
 0x127   :  { %v332_v0 = vpop.f32.mrb[15].mxu1  ;;  %v926_v1 = vadd.f32 %v647_v63, %v166_v34  ;;  %v375_v5 = vmul.f32 %v922_v61, %v922_v61 }
 0x128   :  { %v928_v2 = vadd.f32 %v332_v0, %v166_v34  ;;  %395 = vadd.xlane.f32.xlu1 %v372_v59  ;;  %v373_v3 = vmul.f32 %v924_v62, %v924_v62 }
 0x129   :  { %v376_v8 = vmul.f32 %v926_v1, %v926_v1 }
 0x12a   :  { %397 = vadd.xlane.f32.xlu0 %v373_v3  ;;  %v374_v4 = vmul.f32 %v928_v2, %v928_v2 }
 0x12c   :  { %v650_v7 = vpop.f32.mrb[16].mxu1  ;;  %399 = vadd.xlane.f32.xlu1 %v374_v4 }
 0x12d   :  { %v345_v9 = vpop.f32.mrb[17].mxu1  ;;  %v938_v10 = vadd.f32 %v650_v7, %v166_v34 }
 0x12e   :  { %v940_v11 = vadd.f32 %v345_v9, %v166_v34  ;;  %v651_v12 = vpop.f32.mrb[18].mxu1  ;;  %401 = vadd.xlane.f32.xlu0 %v375_v5 }
 0x12f   :  { %v348_v13 = vpop.f32.mrb[19].mxu1  ;;  %v942_v15 = vadd.f32 %v651_v12, %v166_v34  ;;  %v379_v19 = vmul.f32 %v938_v10, %v938_v10 }
 0x130   :  { %v944_v16 = vadd.f32 %v348_v13, %v166_v34  ;;  %403 = vadd.xlane.f32.xlu1 %v376_v8  ;;  %v377_v17 = vmul.f32 %v940_v11, %v940_v11 }
 0x131   :  { %v380_v21 = vmul.f32 %v942_v15, %v942_v15 }
 0x132   :  { %405 = vadd.xlane.f32.xlu0 %v377_v17  ;;  %v378_v18 = vmul.f32 %v944_v16, %v944_v16 }
 0x134   :  { %407 = vadd.xlane.f32.xlu1 %v378_v18 }
 0x136   :  { %409 = vadd.xlane.f32.xlu0 %v379_v19 }
 0x138   :  { %411 = vadd.xlane.f32.xlu1 %v380_v21 }
 0x13a   :  { %361 = vadd.xlane.f32.xlu0 %v360_v22 }
 0x1a6   :  { %v386_v24 = vpop.xlane.xlu1 %385 }
 0x1a7   :  { %v382_v25 = vpop.xlane.xlu0 %381 }
 0x1a8   :  { %738 = vrsqrt.f32 %v382_v25 }
 0x1aa   :  { %v388_v26 = vpop.xlane.xlu1 %387 }
 0x1ab   :  { %v384_v27 = vpop.xlane.xlu0 %383 }
 0x1ac   :  { %740 = vrsqrt.f32 %v384_v27 }
 0x1ad   :  { %742 = vrsqrt.f32 %v388_v26 }
 0x1ae   :  { %744 = vrsqrt.f32 %v386_v24 }
 0x1af   :  { %v390_v32 = vpop.xlane.xlu0 %389 }
 0x1b1   :  { %v392_v29 = vpop.xlane.xlu1 %391 }
 0x1b2   :  { %v739_v28 = vpop.eup %738  ;;  %746 = vrsqrt.f32 %v392_v29 }
 0x1b3   :  { %v429_v33 = vmul.f32 %v739_v28, %v892_v38  ;;  %748 = vrsqrt.f32 %v390_v32  ;;  %v394_v44 = vpop.xlane.xlu0 %393 }
 0x1b5   :  { %v396_v41 = vpop.xlane.xlu1 %395 }
 0x1b6   :  { %v741_v31 = vpop.eup %740  ;;  %750 = vrsqrt.f32 %v396_v41 }
 0x1b7   :  { %v430_v34 = vmul.f32 %v741_v31, %v898_v43  ;;  %v743_v37 = vpop.eup %742  ;;  %752 = vrsqrt.f32 %v394_v44  ;;  %v398_v51 = vpop.xlane.xlu0 %397 }
 0x1b8   :  { %v745_v39 = vpop.eup %744  ;;  %v432_v42 = vmul.f32 %v743_v37, %v894_v40 }
 0x1b9   :  { %v688_v35 = vpack.c.bf16 %v430_v34, %v429_v33  ;;  %v431_v45 = vmul.f32 %v745_v39, %v890_v36  ;;  %v400_v43 = vpop.xlane.xlu1 %399 }
 0x1ba   :  { %754 = vrsqrt.f32 %v400_v43 }
 0x1bb   :  { %689 = vmatpush3.bf16.xpose.msra.mxu0 %v688_v35  ;;  %v691_v46 = vpack.c.bf16 %v432_v42, %v431_v45  ;;  %756 = vrsqrt.f32 %v398_v51  ;;  %v402_v58 = vpop.xlane.xlu0 %401 }
 0x1bc   :  { %690 = vmatprep.subr.bf16.mxu0 %v778_v23  ;;  %v747_v47 = vpop.eup %746 }
 0x1bd   :  { %v749_v38 = vpop.eup %748  ;;  %v434_v48 = vmul.f32 %v747_v47, %v912_v54  ;;  %v404_v56 = vpop.xlane.xlu1 %403 }
 0x1be   :  { %v433_v52 = vmul.f32 %v749_v38, %v908_v50  ;;  %758 = vrsqrt.f32 %v404_v56 }
 0x1bf   :  { %760 = vrsqrt.f32 %v402_v58  ;;  %v406_v3 = vpop.xlane.xlu0 %405 }
 0x1c0   :  { %v694_v55 = vpack.c.bf16 %v434_v48, %v433_v52  ;;  %v751_v40 = vpop.eup %750 }
 0x1c1   :  { %v753_v36 = vpop.eup %752  ;;  %v436_v57 = vmul.f32 %v751_v40, %v910_v53  ;;  %v408_v63 = vpop.xlane.xlu1 %407 }
 0x1c2   :  { %v435_v59 = vmul.f32 %v753_v36, %v906_v49  ;;  %762 = vrsqrt.f32 %v408_v63 }
 0x1c3   :  { %692 = vmatpush3.bf16.xpose.msra.mxu0 %v691_v46  ;;  %764 = vrsqrt.f32 %v406_v3  ;;  %v410_v8 = vpop.xlane.xlu0 %409 }
 0x1c4   :  { %693 = vmatprep.subr.bf16.mxu0 %v778_v23  ;;  %v697_v60 = vpack.c.bf16 %v436_v57, %v435_v59  ;;  %v755_v54 = vpop.eup %754 }
 0x1c5   :  { %v757_v50 = vpop.eup %756  ;;  %v438_v0 = vmul.f32 %v755_v54, %v928_v2  ;;  %v412_v6 = vpop.xlane.xlu1 %411 }
 0x1c6   :  { %v437_v4 = vmul.f32 %v757_v50, %v924_v62  ;;  %766 = vrsqrt.f32 %v412_v6 }
 0x1c7   :  { %768 = vrsqrt.f32 %v410_v8  ;;  %v362_v17 = vpop.xlane.xlu0 %361 }
 0x1c8   :  { %v700_v5 = vpack.c.bf16 %v438_v0, %v437_v4  ;;  %v759_v53 = vpop.eup %758  ;;  %770 = vrsqrt.f32 %v362_v17 }
 0x1c9   :  { %v761_v49 = vpop.eup %760  ;;  %v440_v7 = vmul.f32 %v759_v53, %v926_v1 }
 0x1ca   :  { %v439_v9 = vmul.f32 %v761_v49, %v922_v61 }
 0x1cb   :  { %695 = vmatpush3.bf16.xpose.msra.mxu0 %v694_v55 }
 0x1cc   :  { %696 = vmatprep.subr.bf16.mxu0 %v778_v23  ;;  %v703_v12 = vpack.c.bf16 %v440_v7, %v439_v9  ;;  %v763_v2 = vpop.eup %762 }
 0x1cd   :  { %v765_v62 = vpop.eup %764  ;;  %v442_v13 = vmul.f32 %v763_v2, %v944_v16 }
 0x1ce   :  { %v441_v14 = vmul.f32 %v765_v62, %v940_v11  ;;  %v517_v11 = vand.u32 127, %v39_v30 }
 0x1d0   :  { %v706_v18 = vpack.c.bf16 %v442_v13, %v441_v14  ;;  %v767_v19 = vpop.eup %766  ;;  %vm518_vm1 = vcmp.lt.s32.totalorder %v517_v11, 1 }
 0x1d1   :  { %v769_v1 = vpop.eup %768  ;;  %v444_v61 = vmul.f32 %v767_v19, %v942_v15 }
 0x1d2   :  { %v443_v21 = vmul.f32 %v769_v1, %v938_v10  ;;  %v771_v24 = vpop.eup %770 }
 0x1d3   :  { %698 = vmatpush3.bf16.xpose.msra.mxu0 %v697_v60  ;;  %v364_v25 = vmul.f32 %v771_v24, %v953_v20 }
 0x1d4   :  { %699 = vmatprep.subr.bf16.mxu0 %v778_v23  ;;  %v709_v22 = vpack.c.bf16 %v444_v61, %v443_v21 }
 0x1db   :  { %701 = vmatpush3.bf16.xpose.msra.mxu0 %v700_v5 }
 0x1dc   :  { %702 = vmatprep.subr.bf16.mxu0 %v778_v23 }
 0x1e3   :  { %704 = vmatpush3.bf16.xpose.msra.mxu0 %v703_v12 }
 0x1e4   :  { %705 = vmatprep.subr.bf16.mxu0 %v778_v23 }
 0x1eb   :  { %707 = vmatpush3.bf16.xpose.msra.mxu0 %v706_v18 }
 0x1ec   :  { %708 = vmatprep.subr.bf16.mxu0 %v778_v23 }
 0x1f3   :  { %710 = vmatpush3.bf16.xpose.msra.mxu0 %v709_v22 }
 0x1fa   :  { %685 = vmatmul.mubr.f32.vlgmr.msra.gmra.mrb[0].mxu0 %v364_v25 }
 0x2cd   :  { %v511_v16 = vpop.f32.mrb[0].mxu0 }
 0x2ce   :  { %v515_v27 = vmul.f32 100.0, %v511_v16  ;;  %v686_v26 = vpop.f32.mrb[1].mxu0 }
 0x2d0   :  { %v519_v28 = vsel %vm518_vm1, %v515_v27, -inf }
 0x2d1   :  { %520 = vmax.xlane.f32.xlu1 %v519_v28 }
 0x35e   :  { %v521_v29 = vpop.xlane.xlu1 %520 }
 0x35f   :  { %v522_v23 = vsub.f32 %v519_v28, %v521_v29 }
 0x361   :  { %v523_v31 = vmul.f32 1.442695, %v522_v23 }
 0x363   :  { %772 = vpow2.f32 %v523_v31 }
 0x36d   :  { %v773_v15 = vpop.eup %772 }
 0x36e   :  { %525 = vadd.xlane.f32.xlu0 %v773_v15 }
 0x3fb   :  { %v526_v10 = vpop.xlane.xlu0 %525 }
 0x3fc   :  { %774 = vrcp.f32 %v526_v10 }
 0x406   :  { %v775_v32 = vpop.eup %774 }
 0x407   :  { %v528_v33 = vmul.f32 %v775_v32, %v773_v15 }
 0x409   :  { %529 = vst [vmem:[%s993_s5] sm:$0xff] %v528_v33 }

</bundles_post_ra>
